<compile_context>
chip_gen: v5e
topology: v5e:2x2
jax: 0.10.0
libtpu: 0.0.40
codegen_flags: <defaults>
</compile_context>

<pallas_src>
import functools

import jax
import jax.numpy as jnp
import numpy as np
from jax import lax
from jax.experimental import pallas as pl
from jax.experimental.pallas import tpu as pltpu


# ----------------------------- kernel -------------------------------------- #
def _ms_cam_kernel(x_ref, w1l_ref, b1l_ref, w2l_ref, b2l_ref,
                   w1g_ref, b1g_ref, w2g_ref, b2g_ref, o_ref,
                   *, block_b, hw_chunk, n_chunks, hw_real):
    f32 = jnp.float32
    c = w2l_ref.shape[0]

    # Small folded conv weights / biases, read once per grid step.
    w1l = w1l_ref[...]          # (I, C)   matmul dtype
    w2l = w2l_ref[...]          # (C, I)
    w1g = w1g_ref[...]          # (I, C)
    w2g = w2g_ref[...]          # (C, I)
    b1l = b1l_ref[...]          # (I, 1)   f32
    b2l = b2l_ref[...]          # (C, 1)
    b1g = b1g_ref[...]          # (I, 1)
    b2g = b2g_ref[...]          # (C, 1)

    inv_hw = f32(1.0 / hw_real)

    def sample_body(b, carry):
        # ---- pass 1: spatial mean (zero padding does not change the sum) ----
        def mean_body(j, acc):
            start = pl.multiple_of(j * hw_chunk, hw_chunk)
            xc = x_ref[b, :, pl.ds(start, hw_chunk)].astype(f32)      # (C, chunk)
            return acc + jnp.sum(xc, axis=-1, keepdims=True)

        csum = lax.fori_loop(0, n_chunks, mean_body, jnp.zeros((c, 1), f32))
        m = (csum * inv_hw).astype(w1g.dtype)                          # (C, 1)

        # ---- global branch: two tiny MXU dots on the pooled vector ----------
        hg = jnp.dot(w1g, m, preferred_element_type=f32) + b1g         # (I, 1)
        hg = jnp.maximum(hg, 0.0).astype(w2g.dtype)
        xg = jnp.dot(w2g, hg, preferred_element_type=f32) + b2g        # (C, 1)
        # Fold the per-sample global logits into the 2nd local-conv bias.
        bias2 = b2l + xg                                                # (C, 1)

        # ---- pass 2: local branch + gate, chunked over the lane (HW) axis ---
        def gate_body(j, carry2):
            start = pl.multiple_of(j * hw_chunk, hw_chunk)
            sl = pl.ds(start, hw_chunk)
            xc = x_ref[b, :, sl]                                        # (C, chunk)
            h = jnp.dot(w1l, xc.astype(w1l.dtype),
                        preferred_element_type=f32) + b1l               # (I, chunk)
            h = jnp.maximum(h, 0.0).astype(w2l.dtype)
            xlg = jnp.dot(w2l, h, preferred_element_type=f32) + bias2   # (C, chunk)
            gate = jax.nn.sigmoid(xlg)
            o_ref[b, :, sl] = (xc.astype(f32) * gate).astype(o_ref.dtype)
            return carry2

        lax.fori_loop(0, n_chunks, gate_body, 0)
        return carry

    lax.fori_loop(0, block_b, sample_body, 0, unroll=True)


# ----------------------------- wrapper -------------------------------------- #
def _fold_bn_into_conv(w, b, bn, eps):
    """Fold eval-mode BatchNorm into a preceding 1x1 conv (w: (out,in), b: (out,))."""
    scale = bn["gamma"] / jnp.sqrt(bn["var"] + eps)
    w_f = (w * scale[:, None]).astype(jnp.float32)
    b_f = (scale * (b - bn["mean"]) + bn["beta"]).astype(jnp.float32)
    return w_f, b_f


def _choose_block_batch(batch, per_sample_bytes, target_bytes, min_steps=4):
    """Samples per grid step: ~target_bytes blocks while keeping >= min_steps steps."""
    bb = int(max(1, min(batch, target_bytes // max(per_sample_bytes, 1))))
    want_steps = min(min_steps, batch)
    while bb > 1 and batch // bb < want_steps:
        bb -= 1
    while batch % bb:            # require exact tiling of the batch
        bb -= 1
    return bb


def _choose_hw_chunk(hw_padded, target=2048):
    """Largest multiple of 128 <= target that divides hw_padded (which is a x128)."""
    if hw_padded <= target:
        return hw_padded
    best = 128
    for cand in range(128, target + 1, 128):
        if hw_padded % cand == 0:
            best = cand
    return best


def ms_cam_pallas(x, params, eps=1e-5, target_block_bytes=4 << 20):
    b, c, h, w = x.shape
    hw = h * w
    hwp = ((hw + 127) // 128) * 128          # lane-dense spatial axis

    lp, gp = params["local"], params["global"]
    w1l, b1l = _fold_bn_into_conv(lp["w1"], lp["b1"], lp["bn1"], eps)
    w2l, b2l = _fold_bn_into_conv(lp["w2"], lp["b2"], lp["bn2"], eps)
    w1g, b1g = _fold_bn_into_conv(gp["w1"], gp["b1"], gp["bn1"], eps)
    w2g, b2g = _fold_bn_into_conv(gp["w2"], gp["b2"], gp["bn2"], eps)
    inter = w1l.shape[0]

    # Matmul operands keep the input dtype when it is bf16 (native bf16 MXU);
    # accumulation is always f32 via preferred_element_type.
    mm_dtype = jnp.bfloat16 if x.dtype == jnp.bfloat16 else jnp.float32
    w1l, w2l, w1g, w2g = (a.astype(mm_dtype) for a in (w1l, w2l, w1g, w2g))

    # Biases as (n, 1) columns so they broadcast along the lane (HW) axis; f32.
    b1l = b1l.reshape(inter, 1)
    b2l = b2l.reshape(c, 1)
    b1g = b1g.reshape(inter, 1)
    b2g = b2g.reshape(c, 1)

    x_flat = x.reshape(b, c, hw)
    if hwp != hw:
        x_flat = jnp.pad(x_flat, ((0, 0), (0, 0), (0, hwp - hw)))

    per_sample_bytes = c * hwp * x.dtype.itemsize
    bb = _choose_block_batch(b, per_sample_bytes, target_block_bytes)
    block_bytes = bb * per_sample_bytes
    hw_chunk = _choose_hw_chunk(hwp)
    n_chunks = hwp // hw_chunk

    # Double-buffered in+out blocks plus chunk intermediates; clamped to a
    # v7x-safe budget (64 MiB physical per TC) and above v5e's 16 MiB default.
    vmem_limit = int(min(48 << 20, max(32 << 20, 4 * block_bytes + (16 << 20))))

    data_spec = pl.BlockSpec((bb, c, hwp), lambda i: (i, 0, 0))

    def full_spec(a):
        return pl.BlockSpec(a.shape, lambda i: (0, 0))

    kern = functools.partial(_ms_cam_kernel, block_b=bb, hw_chunk=hw_chunk,
                             n_chunks=n_chunks, hw_real=hw)

    out_flat = pl.pallas_call(
        kern,
        out_shape=jax.ShapeDtypeStruct((b, c, hwp), x.dtype),
        grid=(b // bb,),
        in_specs=[data_spec,
                  full_spec(w1l), full_spec(b1l), full_spec(w2l), full_spec(b2l),
                  full_spec(w1g), full_spec(b1g), full_spec(w2g), full_spec(b2g)],
        out_specs=data_spec,
        compiler_params=pltpu.CompilerParams(
            dimension_semantics=("parallel",),
            vmem_limit_bytes=vmem_limit),
    )(x_flat, w1l, b1l, w2l, b2l, w1g, b1g, w2g, b2g)

    return out_flat[:, :, :hw].reshape(b, c, h, w)


# ----------------------------- init & reference ----------------------------- #
def init_ms_cam_params(key, channels, r=1):
    """Deterministic MS_CAM parameters (1x1 convs + eval-mode BN stats)."""
    inter = int(channels // r)
    keys = jax.random.split(key, 8)

    def conv(k, out_c, in_c):
        bound = 1.0 / np.sqrt(in_c)  # PyTorch conv default init range (1x1 kernel)
        kw, kb = jax.random.split(k)
        w = jax.random.uniform(kw, (out_c, in_c), jnp.float32, -bound, bound)
        bvec = jax.random.uniform(kb, (out_c,), jnp.float32, -bound, bound)
        return w, bvec

    def bn(k, n):
        k1, k2, k3, k4 = jax.random.split(k, 4)
        return dict(gamma=jax.random.uniform(k1, (n,), jnp.float32, 0.5, 1.5),
                    beta=0.1 * jax.random.normal(k2, (n,), jnp.float32),
                    mean=0.1 * jax.random.normal(k3, (n,), jnp.float32),
                    var=jax.random.uniform(k4, (n,), jnp.float32, 0.5, 1.5))

    def branch(k0, k1, k2, k3):
        w1, b1 = conv(k0, inter, channels)
        w2, b2 = conv(k2, channels, inter)
        return dict(w1=w1, b1=b1, bn1=bn(k1, inter),
                    w2=w2, b2=b2, bn2=bn(k3, channels))

    return {"local": branch(*keys[:4]), "global": branch(*keys[4:])}


def ms_cam_ref(x, params, eps=1e-5):
    """Pure-JAX reference of the same forward semantics (eval-mode BN)."""
    hp = jax.lax.Precision.HIGHEST

    def bn(y, p):
        scale = p["gamma"] / jnp.sqrt(p["var"] + eps)
        shift = p["beta"] - p["mean"] * scale
        return y * scale[None, :, None, None] + shift[None, :, None, None]

    def conv1x1(y, w, bvec):
        return (jnp.einsum("oc,bchw->bohw", w, y, precision=hp)
                + bvec[None, :, None, None])

    def branch(y, p):
        z = jnp.maximum(bn(conv1x1(y, p["w1"], p["b1"]), p["bn1"]), 0.0)
        return bn(conv1x1(z, p["w2"], p["b2"]), p["bn2"])

    xl = branch(x, params["local"])
    xg = branch(jnp.mean(x, axis=(2, 3), keepdims=True), params["global"])
    return x * jax.nn.sigmoid(xl + xg)


# ----------------------------- test ----------------------------------------- #
if __name__ == "__main__":
    B, C, H, W = 2, 4, 16, 16
    R = 1

    key = jax.random.PRNGKey(0)
    kx, kp = jax.random.split(key)
    x = jax.random.normal(kx, (B, C, H, W), dtype=jnp.float32)
    params = init_ms_cam_params(kp, C, R)

    out = jax.block_until_ready(ms_cam_pallas(x, params))
    ref = jax.block_until_ready(ms_cam_ref(x, params))

    np.testing.assert_allclose(np.asarray(out), np.asarray(ref),
                               rtol=2e-4, atol=2e-4)
    print("KERNEL_OK")
</pallas_src>

<mosaic_0001>
module attributes {stable_mosaic.version = 11 : i64} {
  func.func @_ms_cam_kernel(%arg0: i32, %arg1: memref<1x4x256xf32, #tpu.memory_space<vmem>>, %arg2: memref<4x4xf32, #tpu.memory_space<vmem>>, %arg3: memref<4x1xf32, #tpu.memory_space<vmem>>, %arg4: memref<4x4xf32, #tpu.memory_space<vmem>>, %arg5: memref<4x1xf32, #tpu.memory_space<vmem>>, %arg6: memref<4x4xf32, #tpu.memory_space<vmem>>, %arg7: memref<4x1xf32, #tpu.memory_space<vmem>>, %arg8: memref<4x4xf32, #tpu.memory_space<vmem>>, %arg9: memref<4x1xf32, #tpu.memory_space<vmem>>, %arg10: memref<1x4x256xf32, #tpu.memory_space<vmem>>) attributes {dimension_semantics = [#tpu.dimension_semantics<parallel>], iteration_bounds = array<i64: 2>, scalar_prefetch = 0 : i64, scratch_operands = 0 : i64, tpu.core_type = #tpu.core_type<tc>, window_params = [{transform_indices = @transform_0, window_bounds = array<i64: 1, 4, 256>}, {pipeline_mode = #tpu.pipeline_mode<synchronous>, transform_indices = @transform_1, window_bounds = array<i64: 4, 4>}, {pipeline_mode = #tpu.pipeline_mode<synchronous>, transform_indices = @transform_2, window_bounds = array<i64: 4, 1>}, {pipeline_mode = #tpu.pipeline_mode<synchronous>, transform_indices = @transform_3, window_bounds = array<i64: 4, 4>}, {pipeline_mode = #tpu.pipeline_mode<synchronous>, transform_indices = @transform_4, window_bounds = array<i64: 4, 1>}, {pipeline_mode = #tpu.pipeline_mode<synchronous>, transform_indices = @transform_5, window_bounds = array<i64: 4, 4>}, {pipeline_mode = #tpu.pipeline_mode<synchronous>, transform_indices = @transform_6, window_bounds = array<i64: 4, 1>}, {pipeline_mode = #tpu.pipeline_mode<synchronous>, transform_indices = @transform_7, window_bounds = array<i64: 4, 4>}, {pipeline_mode = #tpu.pipeline_mode<synchronous>, transform_indices = @transform_8, window_bounds = array<i64: 4, 1>}, {transform_indices = @transform_9, window_bounds = array<i64: 1, 4, 256>}]} {
    %c0 = arith.constant 0 : index
    %c0_0 = arith.constant 0 : index
    %0 = vector.load %arg2[%c0, %c0_0] : memref<4x4xf32, #tpu.memory_space<vmem>>, vector<4x4xf32>
    %c0_1 = arith.constant 0 : index
    %c0_2 = arith.constant 0 : index
    %1 = vector.load %arg4[%c0_1, %c0_2] : memref<4x4xf32, #tpu.memory_space<vmem>>, vector<4x4xf32>
    %c0_3 = arith.constant 0 : index
    %c0_4 = arith.constant 0 : index
    %2 = vector.load %arg6[%c0_3, %c0_4] : memref<4x4xf32, #tpu.memory_space<vmem>>, vector<4x4xf32>
    %c0_5 = arith.constant 0 : index
    %c0_6 = arith.constant 0 : index
    %3 = vector.load %arg8[%c0_5, %c0_6] : memref<4x4xf32, #tpu.memory_space<vmem>>, vector<4x4xf32>
    %c0_7 = arith.constant 0 : index
    %c0_8 = arith.constant 0 : index
    %4 = vector.load %arg3[%c0_7, %c0_8] : memref<4x1xf32, #tpu.memory_space<vmem>>, vector<4x1xf32>
    %c0_9 = arith.constant 0 : index
    %c0_10 = arith.constant 0 : index
    %5 = vector.load %arg5[%c0_9, %c0_10] : memref<4x1xf32, #tpu.memory_space<vmem>>, vector<4x1xf32>
    %c0_11 = arith.constant 0 : index
    %c0_12 = arith.constant 0 : index
    %6 = vector.load %arg7[%c0_11, %c0_12] : memref<4x1xf32, #tpu.memory_space<vmem>>, vector<4x1xf32>
    %c0_13 = arith.constant 0 : index
    %c0_14 = arith.constant 0 : index
    %7 = vector.load %arg9[%c0_13, %c0_14] : memref<4x1xf32, #tpu.memory_space<vmem>>, vector<4x1xf32>
    %cst = arith.constant 3.906250e-03 : f32
    %c0_i32 = arith.constant 0 : i32
    %cst_15 = arith.constant 0.000000e+00 : f32
    %8 = vector.broadcast %cst_15 : f32 to vector<4x1xf32>
    %c0_i32_16 = arith.constant 0 : i32
    %c256_i32 = arith.constant 256 : i32
    %9 = arith.muli %c0_i32_16, %c256_i32 : i32
    %10 = tpu.assume_multiple %9, 256 : i32
    %11 = arith.index_cast %c0_i32 : i32 to index
    %c0_17 = arith.constant 0 : index
    %12 = arith.index_cast %10 : i32 to index
    %13 = vector.load %arg1[%11, %c0_17, %12] : memref<1x4x256xf32, #tpu.memory_space<vmem>>, vector<1x4x256xf32>
    %14 = vector.shape_cast %13 : vector<1x4x256xf32> to vector<4x256xf32>
    %cst_18 = arith.constant dense<0.000000e+00> : vector<4xf32>
    %15 = vector.multi_reduction <add>, %14, %cst_18 [1] : vector<4x256xf32> to vector<4xf32>
    %16 = vector.shape_cast %15 : vector<4xf32> to vector<4x1xf32>
    %17 = arith.addf %8, %16 : vector<4x1xf32>
    %c1_i32 = arith.constant 1 : i32
    %18 = vector.broadcast %cst : f32 to vector<4x1xf32>
    %19 = arith.mulf %17, %18 : vector<4x1xf32>
    %cst_19 = arith.constant dense<0.000000e+00> : vector<4x1xf32>
    %20 = tpu.matmul %2, %19, %cst_19 {dimension_numbers = #tpu.dot_dimension_numbers<[1], [0], [0], [1], [0, 0, 1, 1], [], []>} : vector<4x4xf32>, vector<4x1xf32>, vector<4x1xf32> -> vector<4x1xf32>
    %21 = arith.addf %20, %6 : vector<4x1xf32>
    %cst_20 = arith.constant 0.000000e+00 : f32
    %22 = vector.broadcast %cst_20 : f32 to vector<4x1xf32>
    %23 = arith.maximumf %21, %22 : vector<4x1xf32>
    %cst_21 = arith.constant dense<0.000000e+00> : vector<4x1xf32>
    %24 = tpu.matmul %3, %23, %cst_21 {dimension_numbers = #tpu.dot_dimension_numbers<[1], [0], [0], [1], [0, 0, 1, 1], [], []>} : vector<4x4xf32>, vector<4x1xf32>, vector<4x1xf32> -> vector<4x1xf32>
    %25 = arith.addf %24, %7 : vector<4x1xf32>
    %26 = arith.addf %5, %25 : vector<4x1xf32>
    %c0_i32_22 = arith.constant 0 : i32
    %c256_i32_23 = arith.constant 256 : i32
    %27 = arith.muli %c0_i32_22, %c256_i32_23 : i32
    %28 = tpu.assume_multiple %27, 256 : i32
    %29 = arith.index_cast %c0_i32 : i32 to index
    %c0_24 = arith.constant 0 : index
    %30 = arith.index_cast %28 : i32 to index
    %31 = vector.load %arg1[%29, %c0_24, %30] : memref<1x4x256xf32, #tpu.memory_space<vmem>>, vector<1x4x256xf32>
    %32 = vector.shape_cast %31 : vector<1x4x256xf32> to vector<4x256xf32>
    %cst_25 = arith.constant dense<0.000000e+00> : vector<4x256xf32>
    %33 = tpu.matmul %0, %32, %cst_25 {dimension_numbers = #tpu.dot_dimension_numbers<[1], [0], [0], [1], [0, 0, 1, 1], [], []>} : vector<4x4xf32>, vector<4x256xf32>, vector<4x256xf32> -> vector<4x256xf32>
    %34 = vector.broadcast %4 : vector<4x1xf32> to vector<4x256xf32>
    %35 = arith.addf %33, %34 : vector<4x256xf32>
    %cst_26 = arith.constant 0.000000e+00 : f32
    %36 = vector.broadcast %cst_26 : f32 to vector<4x256xf32>
    %37 = arith.maximumf %35, %36 : vector<4x256xf32>
    %cst_27 = arith.constant dense<0.000000e+00> : vector<4x256xf32>
    %38 = tpu.matmul %1, %37, %cst_27 {dimension_numbers = #tpu.dot_dimension_numbers<[1], [0], [0], [1], [0, 0, 1, 1], [], []>} : vector<4x4xf32>, vector<4x256xf32>, vector<4x256xf32> -> vector<4x256xf32>
    %39 = vector.broadcast %26 : vector<4x1xf32> to vector<4x256xf32>
    %40 = arith.addf %38, %39 : vector<4x256xf32>
    %41 = arith.negf %40 : vector<4x256xf32>
    %42 = math.exp %41 : vector<4x256xf32>
    %cst_28 = arith.constant 1.000000e+00 : f32
    %43 = vector.broadcast %cst_28 : f32 to vector<4x256xf32>
    %44 = arith.addf %43, %42 : vector<4x256xf32>
    %45 = arith.divf %43, %44 : vector<4x256xf32>
    %46 = arith.mulf %32, %45 : vector<4x256xf32>
    %47 = arith.index_cast %c0_i32 : i32 to index
    %c0_29 = arith.constant 0 : index
    %48 = arith.index_cast %28 : i32 to index
    %49 = vector.load %arg10[%47, %c0_29, %48] : memref<1x4x256xf32, #tpu.memory_space<vmem>>, vector<1x4x256xf32>
    %50 = vector.shape_cast %49 : vector<1x4x256xf32> to vector<4x256xf32>
    %51 = vector.shape_cast %46 : vector<4x256xf32> to vector<1x4x256xf32>
    tpu.vector_store %arg10[%47, %c0_29, %48], %51 {strides = array<i32>} : memref<1x4x256xf32, #tpu.memory_space<vmem>>, vector<1x4x256xf32>,
    %c1_i32_30 = arith.constant 1 : i32
    %c1_i32_31 = arith.constant 1 : i32
    return
  }
  func.func @transform_0(%arg0: i32) -> (i32, i32, i32) {
    %c0_i32 = arith.constant 0 : i32
    %c0_i32_0 = arith.constant 0 : i32
    %c0_i32_1 = arith.constant 0 : i32
    return %arg0, %c0_i32, %c0_i32_0 : i32, i32, i32
  }
  func.func @transform_1(%arg0: i32) -> (i32, i32) {
    %c0_i32 = arith.constant 0 : i32
    %c0_i32_0 = arith.constant 0 : i32
    %c0_i32_1 = arith.constant 0 : i32
    return %c0_i32, %c0_i32_0 : i32, i32
  }
  func.func @transform_2(%arg0: i32) -> (i32, i32) {
    %c0_i32 = arith.constant 0 : i32
    %c0_i32_0 = arith.constant 0 : i32
    %c0_i32_1 = arith.constant 0 : i32
    return %c0_i32, %c0_i32_0 : i32, i32
  }
  func.func @transform_3(%arg0: i32) -> (i32, i32) {
    %c0_i32 = arith.constant 0 : i32
    %c0_i32_0 = arith.constant 0 : i32
    %c0_i32_1 = arith.constant 0 : i32
    return %c0_i32, %c0_i32_0 : i32, i32
  }
  func.func @transform_4(%arg0: i32) -> (i32, i32) {
    %c0_i32 = arith.constant 0 : i32
    %c0_i32_0 = arith.constant 0 : i32
    %c0_i32_1 = arith.constant 0 : i32
    return %c0_i32, %c0_i32_0 : i32, i32
  }
  func.func @transform_5(%arg0: i32) -> (i32, i32) {
    %c0_i32 = arith.constant 0 : i32
    %c0_i32_0 = arith.constant 0 : i32
    %c0_i32_1 = arith.constant 0 : i32
    return %c0_i32, %c0_i32_0 : i32, i32
  }
  func.func @transform_6(%arg0: i32) -> (i32, i32) {
    %c0_i32 = arith.constant 0 : i32
    %c0_i32_0 = arith.constant 0 : i32
    %c0_i32_1 = arith.constant 0 : i32
    return %c0_i32, %c0_i32_0 : i32, i32
  }
  func.func @transform_7(%arg0: i32) -> (i32, i32) {
    %c0_i32 = arith.constant 0 : i32
    %c0_i32_0 = arith.constant 0 : i32
    %c0_i32_1 = arith.constant 0 : i32
    return %c0_i32, %c0_i32_0 : i32, i32
  }
  func.func @transform_8(%arg0: i32) -> (i32, i32) {
    %c0_i32 = arith.constant 0 : i32
    %c0_i32_0 = arith.constant 0 : i32
    %c0_i32_1 = arith.constant 0 : i32
    return %c0_i32, %c0_i32_0 : i32, i32
  }
  func.func @transform_9(%arg0: i32) -> (i32, i32, i32) {
    %c0_i32 = arith.constant 0 : i32
    %c0_i32_0 = arith.constant 0 : i32
    %c0_i32_1 = arith.constant 0 : i32
    return %arg0, %c0_i32, %c0_i32_0 : i32, i32, i32
  }
}

</mosaic_0001>

<bundles_post_ra>
// kernel: tpu_custom_call.1
= control target key start
LH: loop header
LB: loop body
LE: loop exit
PB: predicated region body
PF: predicated region fallthrough
CT: control target
= control target key end

     0   :  { %14 = vsyncpa [#allocation3], 0  ;;  %s1089_s0 = inlined_call_operand.hbm [shape: f32[2,4,256], index: 0, kind: input, shape index: {}]   ;;  %s1090_s1 = inlined_call_operand.vmem [shape: f32[4,4], index: 1, kind: input, shape index: {}]   ;;  %s1091_s2 = inlined_call_operand.vmem [shape: f32[4,1], index: 2, kind: input, shape index: {}]   ;;  %s1092_s3 = inlined_call_operand.vmem [shape: f32[4,4], index: 3, kind: input, shape index: {}]   ;;  %s1093_s4 = inlined_call_operand.vmem [shape: f32[4,1], index: 4, kind: input, shape index: {}]   ;;  %s1094_s5 = inlined_call_operand.vmem [shape: f32[4,4], index: 5, kind: input, shape index: {}]   ;;  %s1095_s6 = inlined_call_operand.vmem [shape: f32[4,1], index: 6, kind: input, shape index: {}]   ;;  %s1096_s7 = inlined_call_operand.vmem [shape: f32[4,4], index: 7, kind: input, shape index: {}]   ;;  %s1097_s8 = inlined_call_operand.vmem [shape: f32[4,1], index: 8, kind: input, shape index: {}]   ;;  %s1098_s9 = inlined_call_operand.hbm [shape: f32[2,4,256], index: 9, kind: output, shape index: {}]  }
   0x1   :  { %16 = vsyncpa [#allocation3 + $0x1], 0 }
   0x2   :  { %17 = vsyncpa [#allocation4], 0 }
   0x3   :  { %19 = vsyncpa [#allocation4 + $0x1], 0  ;;  %s908_s30 = smov 0   ;;  %s910_s10 = smov 0  }
   0x4   :  { %s912_s11 = smov 0   ;;  %s914_s12 = smov 0  }
   0x5 LB: > { %1102 = sst [smem:[#allocation8_spill]] %s851_s11  ;;  %s929_s13 = sadd.s32 4294967295, %s855_s12   ;;  %s855_s12 = sphi %s914_s12, %s1113_s12   ;;  %s851_s11 = sphi %s912_s11, %s1115_s11   ;;  %s847_s10 = sphi %s910_s10, %s1117_s10   ;;  %s843_s30 = sphi %s908_s30, %s1116_s30  }
   0x6   : > { %s672_s14 = sadd.s32 4294967294, %s855_s12   ;;  %s933_s15 = sadd.s32 1, %s855_s12  }
   0x7   : > { %1103 = sst [smem:[#allocation9_spill]] %s933_s15  ;;  %s32_s16 = sadd.s32 1, %s851_s11 }
   0x8   : > { %s29_s17 = ssub.s32 %s855_s12, %s933_s15  ;;  %p39_p0 = scmp.ne.s32.totalorder %s851_s11, %s847_s10 }
   0x9   : > { %p30_p1 = scmp.eq.s32.totalorder %s29_s17, 0  ;;  %p40_p2 = scmp.eq.s32.totalorder %s855_s12, 0 }
   0xa   : > { %p45_p3 = scmp.ne.s32.totalorder %s847_s10, %s843_s30  ;;  %p46_p4 = scmp.eq.s32.totalorder %s929_s13, 0 }
   0xb   : > { %s945_s18 = scalar_select %p30_p1, %s851_s11, %s32_s16  }
   0xc   : > { %p947_p5 = por %p40_p2, %p39_p0  ;;  %p951_p6 = por %p46_p4, %p45_p3 }
   0xd   : > { %1104 = sst [smem:[#allocation10_spill]] %s945_s18  ;;  %p237_p7 = scmp.eq.s32.totalorder %s929_s13, 1 }
   0xe   : > { %p243_p8 = scmp.eq.s32.totalorder %s672_s14, 1  ;;  %p714_p10 = scmp.lt.s32.totalorder %s855_s12, 2 }
   0xf   : > { %p958_p11 = por %p237_p7, %p39_p0  ;;  %s287_s23 = sand.u32 1, %s851_s11  }
  0x10   : > { %p962_p12 = por %p243_p8, %p45_p3  ;;  %s700_s24 = sshll.u32 %s855_s12, 3 }
  0x11   : > { %s675_s25 = sshll.u32 %s287_s23, 3  ;;  %s296_s28 = scalar_lea.hbm %s1089_s0, %s700_s24 }
  0x12   : > { %s298_s29 = sshll.u32 %s296_s28, 4  ;;  %s291_s14 = scalar_lea.vmem [#allocation2], %s675_s25  ;;  %s299_s29 = int_to_ptr.hbm [resolvable:$true] %s298_s29 }
  0x13   : > { %s300_s16 = sshll.u32 %s291_s14, 4  ;;  %p973_p13 = pnand %p714_p10, %p947_p5  ;;  %s301_s16 = int_to_ptr.vmem [resolvable:$true] %s300_s16 }
  0x14   : > { %p678_p0 = scmp.ge.s32.totalorder %s855_s12, 1  ;;  %p305_p1 = scmp.lt.s32.totalorder %s855_s12, 3 }
  0x15   : > { %s288_s18 = scalar_lea.sflag [#allocation3], %s287_s23  ;;  %s759_s11 = sshra.s32 %s299_s29, 4  ;;  %s760_s11 = int_to_ptr.hbm [resolvable:$true] %s759_s11 }
  0x16   : > { %s761_s15 = scalar_lea.hbm %s760_s11, 8  ;;  %p763_p3 = pneg %p973_p13 }
  0x17   : > { %p762_p2 = scmp.ne.s32.totalorder %s760_s11, %s761_s15  ;;  %s766_s19 = scalar_lea.hbm %s1089_s0, 16 }
  0x18   : > { %p767_p5 = scmp.lt.s32.totalorder %s760_s11, %s1089_s0  ;;  %p768_p8 = scmp.lt.s32.totalorder %s766_s19, %s761_s15 }
  0x19   : > { %p764_p4 = pnand %p763_p3, %p762_p2 }
  0x1a   : > { %p769_p10 = por %p768_p8, %p767_p5 }
  0x1b   : > { %p765_p7 = pneg %p764_p4 }
  0x1d   : > { %p770_p9 = pnand %p769_p10, %p765_p7 }
  0x1f   : > { %773 = shalt.err (!%p770_p9)
}
  0x20   : > { %709 = dma.hbm_to_vmem [thread:$0]  (!%p973_p13), %s299_s29, 128, %s301_s16, %s288_s18  }
  0x21   : > { %p306_p2 = pnand %p678_p0, %p305_p1 }
  0x22   : > { %s994_s23 = sand.u32 (!%p306_p2), 1, %s847_s10  }
  0x23   : > { %309 = sbr.rel (%p306_p2) target bundleno = 587 (0x24b), region = 56  ;;  %s679_s11 = sshll.u32 (!%p306_p2), %s994_s23, 3 }
  0x24   : > { %s312_s15 = scalar_lea.sflag (!%p306_p2), [#allocation3], %s994_s23  ;;  %s315_s28 = scalar_lea.vmem (!%p306_p2), [#allocation2], %s679_s11 }
  0x28   : > { %834 = dma.done.wait (%p951_p6), %s312_s15, 128  }
  0x29   : > { %836 = vsyncadd (%p951_p6), %s312_s15, 4294967168  ;;  %v1004_v0 = vld [vmem:[%s315_s28] sm:$0xff]  ;;  %vm366_vm0 = vcmask 1043456   ;;  %vm374_vm1 = vcmask 31744   ;;  %v351_v8 = vld [vmem:[%s1090_s1] sm:$0xf] }
  0x2a   : > { %361 = vst [vmem:[#allocation1] ss:$2 sm:$0xff] %v1004_v0  ;;  %v355_v9 = vld [vmem:[%s1091_s2] sm:$0xf]  ;;  %v857_v10 = vmov 0   ;;  %s701_s14 = sshll.u32 %s929_s13, 3 }
  0x2b   : > { %749 = vset.pattern.permute.xlu0 %v857_v10  ;;  %750 = vset.pattern.permute.xlu1 %v857_v10  ;;  %v353_v13 = vld [vmem:[%s1094_s5] sm:$0xf]  ;;  %s597_s24 = scalar_lea.hbm %s1098_s9, %s701_s14  ;;  %s350_s13 = scalar_lea.vmem [#allocation5], %s679_s11 }
  0x2c   : > { %v352_v18 = vld [vmem:[%s1092_s3] sm:$0xf]  ;;  %s599_s25 = sshll.u32 %s350_s13, 4  ;;  %s601_s19 = sshll.u32 %s597_s24, 4  ;;  %s600_s25 = int_to_ptr.vmem [resolvable:$true] %s599_s25  ;;  %s602_s19 = int_to_ptr.hbm [resolvable:$true] %s601_s19 }
  0x2d   : > { %v357_v20 = vld [vmem:[%s1095_s6] sm:$0xf]  ;;  %s586_s26 = scalar_lea.sflag [#allocation4], %s994_s23  ;;  %s803_s27 = sshra.s32 %s602_s19, 4  ;;  %s804_s27 = int_to_ptr.hbm [resolvable:$true] %s803_s27 }
  0x2e   : > { %v354_v25 = vld [vmem:[%s1096_s7] sm:$0xf]  ;;  %s805_s15 = scalar_lea.hbm %s804_s27, 8  ;;  %s809_s18 = scalar_lea.hbm %s1098_s9, 16 }
  0x2f   : > { %v358_v27 = vld [vmem:[%s1097_s8] sm:$0xf]  ;;  %p806_p6 = scmp.ne.s32.totalorder %s804_s27, %s805_s15  ;;  %p810_p0 = scmp.lt.s32.totalorder %s804_s27, %s1098_s9 }
  0x30   : > { %v356_v29 = vld [vmem:[%s1093_s4] sm:$0xf]  ;;  %p811_p1 = scmp.lt.s32.totalorder %s809_s18, %s805_s15 }
  0x31   : > { %v362_v1 = vld.sshfl [vmem:[#allocation1] sm:$0xff pattern:$0x75316420]  ;;  %v363_v2 = vld.sshfl [vmem:[#allocation1 + $0x8] sm:$0xff pattern:$0x75316420]  ;;  %p807_p9 = pnand %p806_p6, %p958_p11 }
  0x32   : > { %v367_v3 = vsel %vm366_vm0, %v362_v1, 0.0  ;;  %v368_v4 = vsel %vm366_vm0, %v363_v2, 0.0  ;;  %434 = vst [vmem:[#allocation1] ss:$2 sm:$0xff] %v1004_v0  ;;  %p812_p3 = por %p811_p1, %p810_p0 }
  0x33   : > { %v369_v5 = vadd.f32 %v368_v4, %v367_v3  ;;  %p808_p13 = pneg %p807_p9 }
  0x35   : > { %370 = vadd.xlane.f32.xlu0 %v369_v5  ;;  %p813_p4 = pnand %p812_p3, %p808_p13 }
  0x39   : > { %v435_v6 = vld.sshfl [vmem:[#allocation1] sm:$0xff pattern:$0x75316420]  ;;  %v436_v7 = vld.sshfl [vmem:[#allocation1 + $0x8] sm:$0xff pattern:$0x75316420] }
  0x3a   : > { %685 = vmatpush.msk.msra.mxu2 %vm366_vm0, %v435_v6  ;;  %687 = vmatpush.msk.msra.mxu3 %vm366_vm0, %v436_v7 }
  0x3b   : > { %686 = vmatmul.msk.f32.vlgmr.msra.gmra.mxu2 %vm374_vm1, %v351_v8  ;;  %688 = vmatmul.msk.f32.vlgmr.msra.gmra.mxu3 %vm374_vm1, %v351_v8 }
  0x49   : > { %431 = vperm.xlu0 %749, %v355_v9  }
  0xa8   : > { %v371_v11 = vpop.xlane.xlu0 %370 }
  0xa9   : > { %v373_v12 = vmul.f32 0.00390625, %v371_v11 }
  0xab   : > { %681 = vmatpush.msk.msra.mxu0 %vm366_vm0, %v373_v12 }
  0xac   : > { %682 = vmatmul.msk.f32.vlgmr.msra.gmra.mxu0 %vm374_vm1, %v353_v13 }
  0xbb   : > { %v432_v14 = vpop.permute.xlu0 %431 }
  0xbe   : > { %v461_v15 = vpop.f32.mrf.mxu2  ;;  %v481_v19 = vpop.f32.mrf.mxu3 }
  0xbf   : > { %v462_v16 = vadd.f32 %v461_v15, %v432_v14  ;;  %v482_v21 = vadd.f32 %v481_v19, %v432_v14 }
  0xc1   : > { %v484_v17 = vmax.f32 %v462_v16, 0.0  ;;  %v485_v26 = vmax.f32 %v482_v21, 0.0 }
  0xc3   : > { %689 = vmatpush.msk.msrb.mxu0 %vm366_vm0, %v484_v17 }
  0xc4   : > { %690 = vmatmul.msk.f32.vlgmr.msrb.gmra.mxu0 %vm374_vm1, %v352_v18 }
 0x129   : > { %v398_v22 = vpop.f32.mrf.mxu0 }
 0x12a   : > { %v399_v23 = vadd.f32 %v398_v22, %v357_v20 }
 0x12c   : > { %v401_v24 = vmax.f32 %v399_v23, 0.0 }
 0x12e   : > { %683 = vmatpush.msk.msra.mxu1 %vm366_vm0, %v401_v24 }
 0x12f   : > { %684 = vmatmul.msk.f32.vlgmr.msra.gmra.mxu1 %vm374_vm1, %v354_v25 }
 0x130   : > { %691 = vmatpush.msk.msrb.mxu1 %vm366_vm0, %v485_v26 }
 0x137   : > { %692 = vmatmul.msk.f32.vlgmr.msrb.gmra.mxu1 %vm374_vm1, %v352_v18 }
 0x141   : > { %v517_v32 = vpop.f32.mrf.mxu0 }
 0x1ac   : > { %v425_v28 = vpop.f32.mrf.mxu1 }
 0x1ad   : > { %v426_v30 = vadd.f32 %v425_v28, %v358_v27 }
 0x1af   : > { %v428_v31 = vadd.f32 %v426_v30, %v356_v29 }
 0x1b1   : > { %488 = vperm.xlu1 %750, %v428_v31  }
 0x1b4   : > { %v537_v33 = vpop.f32.mrf.mxu1 }
 0x223   : > { %v489_v34 = vpop.permute.xlu1 %488 }
 0x224   : > { %v518_v35 = vadd.f32 %v517_v32, %v489_v34  ;;  %v538_v36 = vadd.f32 %v537_v33, %v489_v34 }
 0x226   : > { %v693_v37 = vmul.f32 -1.442695, %v518_v35  ;;  %v694_v38 = vmul.f32 -1.442695, %v538_v36 }
 0x228   : > { %751 = vpow2.f32 %v693_v37 }
 0x229   : > { %753 = vpow2.f32 %v694_v38 }
 0x22e   : > { %v752_v39 = vpop.eup %751 }
 0x22f   : > { %v754_v40 = vpop.eup %753  ;;  %v546_v41 = vadd.f32 1.0, %v752_v39 }
 0x230   : > { %v547_v42 = vadd.f32 1.0, %v754_v40 }
 0x231   : > { %755 = vrcp.f32 %v546_v41  ;;  %vm553_vm4 = vweird.f32 %v546_v41  ;;  %v559_v53 = vand.u32 2147483648, %v546_v41  ;;  %v557_v56 = vand.u32 2147483647, %v546_v41 }
 0x232   : > { %757 = vrcp.f32 %v547_v42  ;;  %v574_v50 = vand.u32 2147483648, %v547_v42  ;;  %v572_v52 = vand.u32 2147483647, %v547_v42  ;;  %vm568_vm6 = vweird.f32 %v547_v42 }
 0x233   : > { %v560_v61 = vor.u32 1.1754944e-38, %v559_v53  ;;  %vm558_vm9 = vcmp.eq.f32.partialorder %v557_v56, 8.507059e+37 }
 0x234   : > { %v575_v58 = vor.u32 1.1754944e-38, %v574_v50  ;;  %vm573_vm8 = vcmp.eq.f32.partialorder %v572_v52, 8.507059e+37 }
 0x237   : > { %v756_v43 = vpop.eup %755 }
 0x238   : > { %v758_v44 = vpop.eup %757  ;;  %v549_v45 = vmul.f32 %v756_v43, %v546_v41  ;;  %vm554_vm2 = vweird.f32 %v756_v43 }
 0x239   : > { %v564_v46 = vmul.f32 %v758_v44, %v547_v42  ;;  %vm569_vm3 = vweird.f32 %v758_v44  ;;  %vm1047_vm5 = vmor %vm553_vm4, %vm554_vm2 }
 0x23a   : > { %v550_v47 = vsub.f32 1.0, %v549_v45  ;;  %vm570_vm7 = vmor %vm568_vm6, %vm569_vm3 }
 0x23b   : > { %v565_v48 = vsub.f32 1.0, %v564_v46 }
 0x23c   : > { %v551_v49 = vmul.f32 %v756_v43, %v550_v47 }
 0x23d   : > { %v566_v51 = vmul.f32 %v758_v44, %v565_v48 }
 0x23e   : > { %v552_v54 = vadd.f32 %v756_v43, %v551_v49 }
 0x23f   : > { %v567_v57 = vadd.f32 %v758_v44, %v566_v51 }
 0x240   : > { %v556_v59 = vsel %vm1047_vm5, %v756_v43, %v552_v54 }
 0x241   : > { %v571_v60 = vsel %vm570_vm7, %v758_v44, %v567_v57  ;;  %v561_v1 = vsel %vm558_vm9, %v560_v61, %v556_v59 }
 0x242   : > { %v576_v62 = vsel %vm573_vm8, %v575_v58, %v571_v60 }
 0x243   : > { %v580_v63 = vrot.slane %v576_v62, 4 }
 0x245   : > { %v581_v2 = vsel %vm366_vm0, %v561_v1, %v580_v63 }
 0x246   : > { %v583_v3 = vmul.f32 %v581_v2, %v1004_v0 }
 0x248   : > { %584 = vst [vmem:[%s350_s13] sm:$0xff] %v583_v3 }
 0x249   : > { %816 = shalt.err (!%p813_p4)
}
 0x24a   : > { %704 = dma.vmem_to_hbm [thread:$0]  (%p958_p11), %s600_s25, 128, %s602_s19, %s586_s26  }
 0x24b PF: > { %s613_s23 = sand.u32 1, %s843_s30   ;;  %p1112_p7 = scmp.ge.s32.totalorder %s855_s12, 2 }
 0x24c   : > { %s614_s14 = scalar_lea.sflag [#allocation4], %s613_s23 }
 0x24d   : > { %p711_p5 = pnand %p1112_p7, %p962_p12 }
 0x24f   : > { %p712_p8 = pneg %p711_p5 }
 0x251   : > { %838 = dma.done.wait (%p712_p8), %s614_s14, 128  }
 0x252   : > { %840 = vsyncadd (%p712_p8), %s614_s14, 4294967168  ;;  %s1113_s12 = sld [smem:[#allocation9_spill]]  ;;  %s1116_s30 = smov %s847_s10 }
 0x253   : > { %s1114_s16 = sld [smem:[#allocation8_spill]] }
 0x254   : > { %s1115_s11 = sld [smem:[#allocation10_spill]] }
 0x258   : > { %p22_p10 = scmp.ge.s32.totalorder %s1113_s12, 4  }
 0x259   : > { %s1117_s10 = smov %s1114_s16 }
 0x25a   :  { %24 = sbr.rel (!%p22_p10) target bundleno = 5 (0x5), region = 101 }
 0x25f   :  { %620 = vsyncpa [#allocation3], 1 }
 0x260   :  { %622 = vsyncpa [#allocation3 + $0x1], 1 }
 0x261   :  { %623 = vsyncpa [#allocation4], 1 }
 0x262   :  { %625 = vsyncpa [#allocation4 + $0x1], 1 }

</bundles_post_ra>
